<compile_context>
chip_gen: v7x
topology: tpu7x:2x2x1
jax: 0.10.0
libtpu: 0.0.40
codegen_flags: <defaults>
</compile_context>

<pallas_src>
import functools

import jax
import jax.numpy as jnp
from jax.experimental import pallas as pl
from jax.experimental.pallas import tpu as pltpu


def _round_down(a, b):
    return (a // b) * b


def _gem_kernel(p_ref, x_ref, o_ref, acc_ref, *, eps, inv_hw, pad_cols):
    # p_ref:   SMEM (1,)                  -- learnable GeM exponent
    # x_ref:   VMEM (rows, hw_block)      -- input tile
    # o_ref:   VMEM (rows, 1)             -- output tile (resident across k)
    # acc_ref: VMEM (rows, 1) f32 scratch -- running sum of clamp(x, eps)^p
    k = pl.program_id(1)

    @pl.when(k == 0)
    def _init():
        acc_ref[...] = jnp.zeros_like(acc_ref)

    p = p_ref[0]
    x = x_ref[...].astype(jnp.float32)
    # clamp(min=eps) then x^p via exp(p * log(x));  x >= eps > 0, so log is safe.
    y = jnp.maximum(x, eps)
    yp = jnp.exp(p * jnp.log(y))
    acc_ref[...] += jnp.sum(yp, axis=-1, keepdims=True)

    @pl.when(k == pl.num_programs(1) - 1)
    def _finalize():
        s = acc_ref[...]
        if pad_cols:  # static: remove the eps-padded spatial columns' contribution
            s = s - jnp.float32(pad_cols) * jnp.exp(p * jnp.log(jnp.float32(eps)))
        m = s * inv_hw                     # mean via static 1/HW constant
        inv_p = 1.0 / p                    # hoisted scalar reciprocal (once per tile)
        o_ref[...] = jnp.exp(jnp.log(m) * inv_p).astype(o_ref.dtype)


def gem_pallas(x, p, eps=1e-6, rows_per_block=None, hw_block=None,
               vmem_limit_bytes=None):
    """x: (B, C, H, W) float array, p: (1,) float array. Returns (B, C, 1, 1)."""
    B, C, H, W = x.shape
    BC, HW = B * C, H * W
    itemsize = jnp.dtype(x.dtype).itemsize

    # Sublane-packing minimum for the row tile: 8 (f32), 16 (bf16), 32 (int8/fp8).
    min_rows = max(8, 32 // max(1, itemsize))

    # Target ~4 MiB of input per grid step: per-step overhead (~0.35 us) becomes
    # negligible vs. DMA time, and the double-buffered tile + f32 working set
    # stays comfortably inside v7x's 64 MiB VMEM (and v5e/v6e scoped limits).
    target_tile_bytes = 4 << 20
    max_tile_elems = target_tile_bytes // itemsize

    # Spatial (lane) axis: keep the full H*W extent in one block unless it is so
    # large that even a min_rows-tall tile blows the budget; only then split it
    # into 128-aligned chunks and reduce across a second ("arbitrary") grid axis.
    if hw_block is None:
        if HW * min_rows <= max_tile_elems:
            hw_block = HW
        else:
            hw_block = max(128, _round_down(max_tile_elems // min_rows, 128))
    if hw_block >= HW:
        hw_block = HW
    elif hw_block % 128 != 0:
        hw_block = max(128, _round_down(hw_block, 128))
    hw_chunks = pl.cdiv(HW, hw_block)
    HW_pad = hw_chunks * hw_block
    pad_cols = HW_pad - HW

    # Row (sublane) axis: as many rows as fit the per-step byte budget, but keep
    # >= ~8 row-steps when B*C allows it so the DMA pipeline stays deep and the
    # "parallel" axis still shards across v7x's 2 TensorCores.
    if rows_per_block is None:
        rows = max(min_rows, _round_down(max_tile_elems // hw_block, min_rows))
        if BC // rows < 8:
            rows = max(min_rows, _round_down(max(BC // 8, 1), min_rows))
        rows_per_block = rows
    rows_per_block = max(min_rows, _round_down(rows_per_block, min_rows))

    row_blocks = pl.cdiv(BC, rows_per_block)
    BC_pad = row_blocks * rows_per_block
    pad_rows = BC_pad - BC

    xf = x.reshape(BC, HW)
    if pad_rows or pad_cols:
        # Pad with eps: each padded element contributes exactly eps^p to a row
        # sum (subtracted in the kernel); padded rows are sliced away below.
        xf = jnp.pad(xf, ((0, pad_rows), (0, pad_cols)), constant_values=eps)

    if vmem_limit_bytes is None:
        tile_in = rows_per_block * hw_block * itemsize
        tile_f32 = rows_per_block * hw_block * 4
        col_pad = (-(-rows_per_block // 8)) * 8 * 128 * 4  # (rows,1) lanes pad to 128
        need = 2 * tile_in + 3 * tile_f32 + 3 * col_pad + (2 << 20)
        # Raise v5e's 16 MiB scoped default; stay inside v7x's 64 MiB physical VMEM.
        vmem_limit_bytes = int(min(max(need, 32 << 20), 64 << 20))

    grid = (row_blocks, hw_chunks)  # reduction axis last

    out = pl.pallas_call(
        functools.partial(_gem_kernel, eps=float(eps), inv_hw=1.0 / HW,
                          pad_cols=int(pad_cols)),
        out_shape=jax.ShapeDtypeStruct((BC_pad, 1), x.dtype),
        grid=grid,
        in_specs=[
            pl.BlockSpec(memory_space=pltpu.SMEM),                         # p (scalar)
            pl.BlockSpec((rows_per_block, hw_block), lambda i, k: (i, k)),  # x tile
        ],
        out_specs=pl.BlockSpec((rows_per_block, 1), lambda i, k: (i, 0)),
        scratch_shapes=[pltpu.VMEM((rows_per_block, 1), jnp.float32)],
        compiler_params=pltpu.CompilerParams(
            dimension_semantics=("parallel", "arbitrary"),
            vmem_limit_bytes=vmem_limit_bytes,
        ),
    )(p, xf)

    return out[:BC].reshape(B, C, 1, 1)


def gem_reference(x, p, eps=1e-6):
    """Pure-JAX reference matching the PyTorch module."""
    y = jnp.maximum(x, eps) ** p[0]
    m = jnp.mean(y, axis=(-2, -1), keepdims=True)
    return m ** (1.0 / p[0])


if __name__ == "__main__":
    key = jax.random.PRNGKey(0)

    B, C, H, W = 2, 4, 16, 16
    x = jax.random.normal(key, (B, C, H, W), dtype=jnp.float32)

    # GeM.__init__: self.p = Parameter(torch.ones(1) * 3)
    p = jnp.ones((1,), dtype=jnp.float32) * 3.0
    eps = 1e-6

    out = gem_pallas(x, p, eps=eps)
    jax.block_until_ready(out)

    ref = gem_reference(x, p, eps=eps)
    assert out.shape == (B, C, 1, 1), out.shape
    assert jnp.allclose(out, ref, rtol=1e-4, atol=1e-5), (
        float(jnp.max(jnp.abs(out - ref)))
    )

    print("KERNEL_OK")
</pallas_src>

<mosaic_0001>
module attributes {stable_mosaic.version = 11 : i64} {
  func.func @_gem_kernel(%arg0: i32, %arg1: i32, %arg2: memref<1xf32, #tpu.memory_space<smem>>, %arg3: memref<8x256xf32, #tpu.memory_space<vmem>>, %arg4: memref<8x1xf32, #tpu.memory_space<vmem>>, %arg5: memref<8x1xf32, #tpu.memory_space<vmem>>) attributes {dimension_semantics = [#tpu.dimension_semantics<parallel>, #tpu.dimension_semantics<arbitrary>], iteration_bounds = array<i64: 1, 1>, scalar_prefetch = 0 : i64, scratch_operands = 1 : i64, tpu.core_type = #tpu.core_type<tc>, window_params = [{transform_indices = @transform_0, window_bounds = array<i64: 1>}, {transform_indices = @transform_1, window_bounds = array<i64: 8, 256>}, {transform_indices = @transform_2, window_bounds = array<i64: 8, 1>}]} {
    %c0_i32 = arith.constant 0 : i32
    %0 = arith.cmpi eq, %arg1, %c0_i32 : i32
    %1 = arith.extui %0 : i1 to i32
    %c0_i32_0 = arith.constant 0 : i32
    %2 = arith.cmpi ne, %1, %c0_i32_0 : i32
    scf.if %2 {
      %cst_10 = arith.constant 0.000000e+00 : f32
      %19 = vector.broadcast %cst_10 : f32 to vector<8x1xf32>
      %c0_11 = arith.constant 0 : index
      %c0_12 = arith.constant 0 : index
      %20 = vector.load %arg5[%c0_11, %c0_12] : memref<8x1xf32, #tpu.memory_space<vmem>>, vector<8x1xf32>
      tpu.vector_store %arg5[%c0_11, %c0_12], %19 {strides = array<i32>} : memref<8x1xf32, #tpu.memory_space<vmem>>, vector<8x1xf32>,
    } else {
    }
    %c0 = arith.constant 0 : index
    %3 = memref.load %arg2[%c0] : memref<1xf32, #tpu.memory_space<smem>>
    %c0_1 = arith.constant 0 : index
    %c0_2 = arith.constant 0 : index
    %4 = vector.load %arg3[%c0_1, %c0_2] : memref<8x256xf32, #tpu.memory_space<vmem>>, vector<8x256xf32>
    %cst = arith.constant 9.99999997E-7 : f32
    %5 = vector.broadcast %cst : f32 to vector<8x256xf32>
    %6 = arith.maximumf %4, %5 : vector<8x256xf32>
    %7 = math.log %6 : vector<8x256xf32>
    %8 = vector.broadcast %3 : f32 to vector<8x256xf32>
    %9 = arith.mulf %8, %7 : vector<8x256xf32>
    %10 = math.exp %9 : vector<8x256xf32>
    %c0_3 = arith.constant 0 : index
    %c0_4 = arith.constant 0 : index
    %11 = vector.load %arg5[%c0_3, %c0_4] : memref<8x1xf32, #tpu.memory_space<vmem>>, vector<8x1xf32>
    %cst_5 = arith.constant dense<0.000000e+00> : vector<8xf32>
    %12 = vector.multi_reduction <add>, %10, %cst_5 [1] : vector<8x256xf32> to vector<8xf32>
    %13 = vector.shape_cast %12 : vector<8xf32> to vector<8x1xf32>
    %14 = arith.addf %11, %13 : vector<8x1xf32>
    %c0_6 = arith.constant 0 : index
    %c0_7 = arith.constant 0 : index
    %15 = vector.load %arg5[%c0_6, %c0_7] : memref<8x1xf32, #tpu.memory_space<vmem>>, vector<8x1xf32>
    tpu.vector_store %arg5[%c0_6, %c0_7], %14 {strides = array<i32>} : memref<8x1xf32, #tpu.memory_space<vmem>>, vector<8x1xf32>,
    %c0_i32_8 = arith.constant 0 : i32
    %16 = arith.cmpi eq, %arg1, %c0_i32_8 : i32
    %17 = arith.extui %16 : i1 to i32
    %c0_i32_9 = arith.constant 0 : i32
    %18 = arith.cmpi ne, %17, %c0_i32_9 : i32
    scf.if %18 {
      %c0_10 = arith.constant 0 : index
      %c0_11 = arith.constant 0 : index
      %19 = vector.load %arg5[%c0_10, %c0_11] : memref<8x1xf32, #tpu.memory_space<vmem>>, vector<8x1xf32>
      %cst_12 = arith.constant 3.906250e-03 : f32
      %20 = vector.broadcast %cst_12 : f32 to vector<8x1xf32>
      %21 = arith.mulf %19, %20 : vector<8x1xf32>
      %cst_13 = arith.constant 1.000000e+00 : f32
      %22 = arith.divf %cst_13, %3 : f32
      %23 = math.log %21 : vector<8x1xf32>
      %24 = vector.broadcast %22 : f32 to vector<8x1xf32>
      %25 = arith.mulf %23, %24 : vector<8x1xf32>
      %26 = math.exp %25 : vector<8x1xf32>
      %c0_14 = arith.constant 0 : index
      %c0_15 = arith.constant 0 : index
      %27 = vector.load %arg4[%c0_14, %c0_15] : memref<8x1xf32, #tpu.memory_space<vmem>>, vector<8x1xf32>
      tpu.vector_store %arg4[%c0_14, %c0_15], %26 {strides = array<i32>} : memref<8x1xf32, #tpu.memory_space<vmem>>, vector<8x1xf32>,
    } else {
    }
    return
  }
  func.func @transform_0(%arg0: i32, %arg1: i32) -> i32 {
    %c0_i32 = arith.constant 0 : i32
    %c0_i32_0 = arith.constant 0 : i32
    return %c0_i32 : i32
  }
  func.func @transform_1(%arg0: i32, %arg1: i32) -> (i32, i32) {
    %c0_i32 = arith.constant 0 : i32
    return %arg0, %arg1 : i32, i32
  }
  func.func @transform_2(%arg0: i32, %arg1: i32) -> (i32, i32) {
    %c0_i32 = arith.constant 0 : i32
    %c0_i32_0 = arith.constant 0 : i32
    return %arg0, %c0_i32 : i32, i32
  }
}

</mosaic_0001>

<bundles_post_ra>
// kernel: tpu_custom_call.1
= control target key start
LH: loop header
LB: loop body
LE: loop exit
PB: predicated region body
PF: predicated region fallthrough
CT: control target
= control target key end

     0   :  { %8 = vsyncpa [#allocation5], 0  ;;  %s115_s9 = smov [#allocation4]   ;;  %s153_s0 = inlined_call_operand.<no memory space> [shape: f32[1], index: 0, kind: input, shape index: {}]   ;;  %s154_s1 = inlined_call_operand.hbm [shape: f32[8,256], index: 1, kind: input, shape index: {}]   ;;  %s155_s2 = inlined_call_operand.vmem [shape: f32[8,1], index: 2, kind: output, shape index: {}]  }
   0x1   :  { %s17_s10 = sshll.u32 %s115_s9, 4  ;;  %s91_s13 = scalar_lea.hbm %s154_s1, 256  ;;  %s18_s10 = int_to_ptr.vmem [resolvable:$true] %s17_s10 }
   0x2   :  { %p92_p0 = scmp.ne.s32.totalorder %s154_s1, %s91_s13  ;;  %p95_p1 = scmp.lt.u32.totalorder %s91_s13, %s154_s1 }
   0x4   :  { %p97_p2 = pnand %p95_p1, %p92_p0 }
   0x6   :  { %100 = shalt.err (!%p97_p2)
}
   0x7   :  { %s101_s18 = scalar_lea.vmem %s18_s10, 256  ;;  %p106_p4 = scmp.lt.s32.totalorder %s18_s10, %s18_s10 }
   0x8   :  { %p102_p3 = scmp.ne.s32.totalorder %s18_s10, %s101_s18  ;;  %p107_p5 = scmp.lt.s32.totalorder %s101_s18, %s101_s18 }
   0xa   :  { %p108_p6 = por %p107_p5, %p106_p4 }
   0xc   :  { %p109_p7 = pnand %p108_p6, %p102_p3 }
   0xe   :  { %112 = shalt.err (!%p109_p7)
}
   0xf   :  { %20 = dma.hbm_to_vmem [thread:$0]  %s154_s1, 256, %s18_s10, [#allocation5]  }
  0x10   :  { %113 = dma.done.wait [#allocation5], 256  }
  0x11   :  { %114 = vsyncadd [#allocation5], 4294967040  ;;  %vm28_vm0 = vcmask 7168   ;;  %v39_v0 = vstv %s153_s0  ;;  %v116_v1 = vmov 0.0   ;;  %v31_v2 = vld [vmem:[#allocation4] sm:$0xff]  ;;  %v32_v3 = vld [vmem:[#allocation4 + $0x8] sm:$0xff] }
  0x12   :  { %29 = vst.msk [vmem:[#allocation2] sm:$0xff] %vm28_vm0, %v116_v1  ;;  %77 = vrcp.f32 %v39_v0  ;;  %v33_v4 = vmax.f32 %v31_v2, 1e-06  ;;  %v34_v5 = vmax.f32 %v32_v3, 1e-06 }
  0x14   :  { %79 = vlog2.f32 %v33_v4 }
  0x15   :  { %81 = vlog2.f32 %v34_v5 }
  0x19   :  { %v46_v18 = vld [vmem:[#allocation2] sm:$0xff] }
  0x1c   :  { %v78_v6 = vpop.eup %77 }
  0x1d   :  { %73 = vpush %v78_v6 }
  0x1e   :  { %v80_v7 = vpop.eup %79 }
  0x1f   :  { %v82_v8 = vpop.eup %81  ;;  %v36_v9 = vmul.f32 0.6931472, %v80_v7 }
  0x20   :  { %v38_v10 = vmul.f32 0.6931472, %v82_v8 }
  0x21   :  { %v40_v11 = vmul.f32 %v39_v0, %v36_v9 }
  0x22   :  { %v41_v12 = vmul.f32 %v39_v0, %v38_v10 }
  0x23   :  { %v42_v13 = vmul.f32 1.442695, %v40_v11 }
  0x24   :  { %v44_v14 = vmul.f32 1.442695, %v41_v12 }
  0x25   :  { %83 = vpow2.f32 %v42_v13 }
  0x26   :  { %85 = vpow2.f32 %v44_v14 }
  0x2f   :  { %v84_v15 = vpop.eup %83 }
  0x30   :  { %v86_v16 = vpop.eup %85 }
  0x31   :  { %v47_v17 = vadd.f32 %v86_v16, %v84_v15 }
  0x33   :  { %48 = vadd.xlane.f32.xlu0 %v47_v17 }
  0x4e   :  { %s74_s0 = spop %73 }
  0x4f   :  { %v63_v24 = vstv %s74_s0 }
  0xc0   :  { %v49_v19 = vpop.xlane.xlu0 %48 }
  0xc1   :  { %v50_v20 = vadd.f32 %v49_v19, %v46_v18 }
  0xc3   :  { %52 = vst.msk [vmem:[#allocation2] sm:$0xff] %vm28_vm0, %v50_v20 }
  0xca   :  { %v56_v21 = vld [vmem:[#allocation2] sm:$0xff] }
  0xcb   :  { %v57_v22 = vmul.f32 0.00390625, %v56_v21 }
  0xcd   :  { %87 = vlog2.f32 %v57_v22 }
  0xd7   :  { %v88_v23 = vpop.eup %87 }
  0xd8   :  { %v62_v25 = vmul.f32 0.6931472, %v88_v23 }
  0xda   :  { %v64_v26 = vmul.f32 %v63_v24, %v62_v25 }
  0xdc   :  { %v65_v27 = vmul.f32 1.442695, %v64_v26 }
  0xde   :  { %89 = vpow2.f32 %v65_v27 }
  0xe8   :  { %v90_v28 = vpop.eup %89 }
  0xe9   :  { %67 = vst.msk [vmem:[%s155_s2] sm:$0xff] %vm28_vm0, %v90_v28 }
  0xea   :  { %72 = vsyncpa [#allocation5], 1 }

</bundles_post_ra>
